<compile_context>
chip_gen: v7x
topology: tpu7x:2x2x1
jax: 0.10.0
libtpu: 0.0.40
codegen_flags: <defaults>
</compile_context>

<pallas_src>
import jax
import jax.numpy as jnp
import numpy as np
from jax.experimental import pallas as pl
from jax.experimental.pallas import tpu as pltpu

GDL_WEIGHT = 0.01
_MAX_TILE_ELEMS = 256 * 1024      # ~1 MiB of f32 per (B, H*W) input buffer


def _make_kernel(W, HW, use_xlu_roll):
    def _roll_lane(x, shift):
        shift = shift % HW
        if shift == 0:                       # identity roll (W==1 / H==1 cases)
            return x
        if use_xlu_roll:
            # XLU rotate: same semantics as jnp.roll, no slice+concat copies.
            return pltpu.roll(x, shift, axis=1)
        # Fallback for non-128-aligned lane extents (riskier vrot codegen path).
        return jnp.roll(x, shift, axis=1)

    def kernel(pred_ref, gt_ref, wrap_ref, mse_ref, gdh_ref, gdw_ref):
        # pred_ref / gt_ref: (B, H*W) tiles in the *input* dtype.
        p = pred_ref[...].astype(jnp.float32)
        g = gt_ref[...].astype(jnp.float32)

        # Single difference; its gradients are all we need (sign folded by |.|).
        d = p - g

        # H-gradient (torch dim=2): circular shift of each plane by one row
        # == roll of the flattened (lane) axis by W.
        dh = _roll_lane(d, W) - d

        # W-gradient (torch dim=3): flat roll by 1 everywhere except the
        # w == 0 columns, which are patched from a flat roll by HW-(W-1)
        # (== roll by -(W-1)).
        r_main = _roll_lane(d, 1)
        r_wrap = _roll_lane(d, HW - (W - 1))
        # wrap_ref is (1, HW): the compare is per lane (not per element) and
        # broadcasts down the plane axis inside the select.
        dw = jnp.where(wrap_ref[...] > 0.5, r_wrap, r_main) - d

        # Collapse both axes in-kernel (cross-lane reduce on the idle XLU) so
        # each grid step stores 3 scalars (12 B) instead of 3*HW*4 B.
        def psum(x):                                    # (B, HW) -> (1, 1)
            s = jnp.sum(x, axis=1, keepdims=True)       # lane reduce   -> (B, 1)
            return jnp.sum(s, axis=0, keepdims=True)    # sublane reduce -> (1, 1)

        mse_ref[...] = psum(d * d)
        gdh_ref[...] = psum(jnp.abs(dh))
        gdw_ref[...] = psum(jnp.abs(dw))

    return kernel


def _sublane(dtype):
    return {4: 8, 2: 16, 1: 32}.get(jnp.dtype(dtype).itemsize, 8)


def gradient_difference_loss(pred, gt, gdl_weight=GDL_WEIGHT):
    """pred, gt: (N, C, H, W) arrays; returns the scalar float32 loss."""
    N, C, H, W = pred.shape
    NC, HW = N * C, H * W

    # Lane-dense view: one image plane per row (pure reshape, no copy).
    pred_f = pred.reshape(NC, HW)
    gt_f = gt.reshape(NC, HW)

    # ---- Block sizing --------------------------------------------------------
    # ~1 MiB of f32 per input buffer, rounded to the dtype's sublane multiple.
    # No artificial 32-row floor: for large HW the block honours the budget so
    # double-buffered inputs + f32 temporaries fit v7x's 64 MiB VMEM.
    hw_pad = ((HW + 127) // 128) * 128
    sublane = max(_sublane(pred.dtype), _sublane(gt.dtype))
    max_b = max(1, _MAX_TILE_ELEMS // hw_pad)
    B = min(max_b, NC)
    B = max(sublane, (B // sublane) * sublane)
    nb = (NC + B - 1) // B
    if nb == 1 and NC > sublane:
        # v7x has 2 TensorCores: give the "parallel" grid axis >= 2 steps so
        # both cores get work (one extra ~0.35us step; no effect on v5e/v6e).
        half = (NC + 1) // 2
        B = ((half + sublane - 1) // sublane) * sublane
        nb = (NC + B - 1) // B
    pad = nb * B - NC
    if pad:
        # Zero-padded planes give d == 0 -> contribute exactly 0 to every sum.
        pred_f = jnp.pad(pred_f, ((0, pad), (0, 0)))
        gt_f = jnp.pad(gt_f, ((0, pad), (0, 0)))

    # Mask of the w == 0 lane positions (precomputed outside the kernel).  Its
    # block index is constant across grid steps, so it is DMA'd only once.
    wrap_mask = ((jnp.arange(HW) % W) == 0).astype(jnp.float32).reshape(1, HW)

    # Right-sized VMEM budget: double-buffered inputs + generous room for the
    # f32 temporaries, floored at 32 MiB (v7x-friendly), capped below physical.
    in_bytes = 2 * B * hw_pad * (jnp.dtype(pred.dtype).itemsize
                                 + jnp.dtype(gt.dtype).itemsize)
    tmp_bytes = 8 * B * hw_pad * 4
    vmem_limit = max(32 << 20, min(100 << 20, int(1.25 * (in_bytes + tmp_bytes))))

    scalar_shape = jax.ShapeDtypeStruct((nb, 1, 1), jnp.float32)
    scalar_spec = pl.BlockSpec((None, 1, 1), lambda i: (i, 0, 0))

    partials = pl.pallas_call(
        _make_kernel(W, HW, use_xlu_roll=(HW % 128 == 0)),
        out_shape=(scalar_shape, scalar_shape, scalar_shape),
        grid_spec=pltpu.PrefetchScalarGridSpec(
            num_scalar_prefetch=0,
            grid=(nb,),
            in_specs=[
                pl.BlockSpec((B, HW), lambda i: (i, 0)),
                pl.BlockSpec((B, HW), lambda i: (i, 0)),
                pl.BlockSpec((1, HW), lambda i: (0, 0)),
            ],
            out_specs=(scalar_spec, scalar_spec, scalar_spec),
        ),
        compiler_params=pltpu.CompilerParams(
            dimension_semantics=("parallel",),   # no cross-step state
            vmem_limit_bytes=vmem_limit,
        ),
    )(pred_f, gt_f, wrap_mask)

    total = jnp.float32(NC * HW)
    mse = jnp.sum(partials[0]) / total
    gdl = (jnp.sum(partials[1]) + jnp.sum(partials[2])) / total
    return mse + jnp.float32(gdl_weight) * gdl


def _reference(pred, gt, gdl_weight=GDL_WEIGHT):
    pred = pred.astype(jnp.float32)
    gt = gt.astype(jnp.float32)
    ogx = jnp.roll(gt, 1, axis=2) - gt
    pgx = jnp.roll(pred, 1, axis=2) - pred
    ogy = jnp.roll(gt, 1, axis=3) - gt
    pgy = jnp.roll(pred, 1, axis=3) - pred
    gdl = jnp.mean(jnp.abs(ogx - pgx)) + jnp.mean(jnp.abs(ogy - pgy))
    return jnp.mean((pred - gt) ** 2) + gdl_weight * gdl


if __name__ == "__main__":
    key = jax.random.PRNGKey(0)
    k1, k2 = jax.random.split(key)
    N, C, H, W = 2, 4, 16, 16

    # pred in [0, 1]; gt binary (matches the asserts in the PyTorch module;
    # the data-dependent asserts themselves are not re-checked in the kernel).
    pred = jax.random.uniform(k1, (N, C, H, W), dtype=jnp.float32)
    gt = (jax.random.uniform(k2, (N, C, H, W)) > 0.5).astype(jnp.float32)

    loss = jax.block_until_ready(gradient_difference_loss(pred, gt))
    ref = jax.block_until_ready(_reference(pred, gt))
    np.testing.assert_allclose(np.asarray(loss), np.asarray(ref),
                               rtol=1e-5, atol=1e-6)
    print("KERNEL_OK")
</pallas_src>

<mosaic_0001>
module attributes {stable_mosaic.version = 11 : i64} {
  func.func @kernel(%arg0: i32, %arg1: memref<8x256xf32, #tpu.memory_space<vmem>>, %arg2: memref<8x256xf32, #tpu.memory_space<vmem>>, %arg3: memref<1x256xf32, #tpu.memory_space<vmem>>, %arg4: memref<1x1x1xf32, #tpu.memory_space<vmem>>, %arg5: memref<1x1x1xf32, #tpu.memory_space<vmem>>, %arg6: memref<1x1x1xf32, #tpu.memory_space<vmem>>) attributes {dimension_semantics = [#tpu.dimension_semantics<parallel>], iteration_bounds = array<i64: 1>, scalar_prefetch = 0 : i64, scratch_operands = 0 : i64, tpu.core_type = #tpu.core_type<tc>, window_params = [{transform_indices = @transform_0, window_bounds = array<i64: 8, 256>}, {transform_indices = @transform_1, window_bounds = array<i64: 8, 256>}, {pipeline_mode = #tpu.pipeline_mode<synchronous>, transform_indices = @transform_2, window_bounds = array<i64: 1, 256>}, {transform_indices = @transform_3, window_bounds = array<i64: 1, 1, 1>}, {transform_indices = @transform_4, window_bounds = array<i64: 1, 1, 1>}, {transform_indices = @transform_5, window_bounds = array<i64: 1, 1, 1>}]} {
    %c0 = arith.constant 0 : index
    %c0_0 = arith.constant 0 : index
    %0 = vector.load %arg1[%c0, %c0_0] : memref<8x256xf32, #tpu.memory_space<vmem>>, vector<8x256xf32>
    %c0_1 = arith.constant 0 : index
    %c0_2 = arith.constant 0 : index
    %1 = vector.load %arg2[%c0_1, %c0_2] : memref<8x256xf32, #tpu.memory_space<vmem>>, vector<8x256xf32>
    %2 = arith.subf %0, %1 : vector<8x256xf32>
    %c16_i32 = arith.constant 16 : i32
    %3 = tpu.dynamic_rotate %2 by %c16_i32 dim 1 : vector<8x256xf32>, i32 -> vector<8x256xf32>
    %4 = arith.subf %3, %2 : vector<8x256xf32>
    %c1_i32 = arith.constant 1 : i32
    %5 = tpu.dynamic_rotate %2 by %c1_i32 dim 1 : vector<8x256xf32>, i32 -> vector<8x256xf32>
    %c241_i32 = arith.constant 241 : i32
    %6 = tpu.dynamic_rotate %2 by %c241_i32 dim 1 : vector<8x256xf32>, i32 -> vector<8x256xf32>
    %c0_3 = arith.constant 0 : index
    %c0_4 = arith.constant 0 : index
    %7 = vector.load %arg3[%c0_3, %c0_4] : memref<1x256xf32, #tpu.memory_space<vmem>>, vector<1x256xf32>
    %cst = arith.constant 5.000000e-01 : f32
    %8 = vector.broadcast %cst : f32 to vector<1x256xf32>
    %9 = arith.cmpf ogt, %7, %8 : vector<1x256xf32>
    %10 = vector.shape_cast %9 : vector<1x256xi1> to vector<1x256xi1>
    %11 = vector.broadcast %10 : vector<1x256xi1> to vector<8x256xi1>
    %12 = arith.select %11, %6, %5 : vector<8x256xi1>, vector<8x256xf32>
    %13 = arith.subf %12, %2 : vector<8x256xf32>
    %14 = arith.mulf %2, %2 : vector<8x256xf32>
    %cst_5 = arith.constant dense<0.000000e+00> : vector<8xf32>
    %15 = vector.multi_reduction <add>, %14, %cst_5 [1] : vector<8x256xf32> to vector<8xf32>
    %16 = vector.shape_cast %15 : vector<8xf32> to vector<8x1xf32>
    %cst_6 = arith.constant dense<0.000000e+00> : vector<1xf32>
    %17 = vector.multi_reduction <add>, %16, %cst_6 [0] : vector<8x1xf32> to vector<1xf32>
    %18 = vector.shape_cast %17 : vector<1xf32> to vector<1x1xf32>
    %c0_7 = arith.constant 0 : index
    %c0_8 = arith.constant 0 : index
    %c0_9 = arith.constant 0 : index
    %19 = vector.load %arg4[%c0_7, %c0_8, %c0_9] : memref<1x1x1xf32, #tpu.memory_space<vmem>>, vector<1x1x1xf32>
    %20 = vector.shape_cast %19 : vector<1x1x1xf32> to vector<1x1xf32>
    %21 = vector.shape_cast %18 : vector<1x1xf32> to vector<1x1x1xf32>
    tpu.vector_store %arg4[%c0_7, %c0_8, %c0_9], %21 {strides = array<i32>} : memref<1x1x1xf32, #tpu.memory_space<vmem>>, vector<1x1x1xf32>,
    %22 = math.absf %4 : vector<8x256xf32>
    %cst_10 = arith.constant dense<0.000000e+00> : vector<8xf32>
    %23 = vector.multi_reduction <add>, %22, %cst_10 [1] : vector<8x256xf32> to vector<8xf32>
    %24 = vector.shape_cast %23 : vector<8xf32> to vector<8x1xf32>
    %cst_11 = arith.constant dense<0.000000e+00> : vector<1xf32>
    %25 = vector.multi_reduction <add>, %24, %cst_11 [0] : vector<8x1xf32> to vector<1xf32>
    %26 = vector.shape_cast %25 : vector<1xf32> to vector<1x1xf32>
    %c0_12 = arith.constant 0 : index
    %c0_13 = arith.constant 0 : index
    %c0_14 = arith.constant 0 : index
    %27 = vector.load %arg5[%c0_12, %c0_13, %c0_14] : memref<1x1x1xf32, #tpu.memory_space<vmem>>, vector<1x1x1xf32>
    %28 = vector.shape_cast %27 : vector<1x1x1xf32> to vector<1x1xf32>
    %29 = vector.shape_cast %26 : vector<1x1xf32> to vector<1x1x1xf32>
    tpu.vector_store %arg5[%c0_12, %c0_13, %c0_14], %29 {strides = array<i32>} : memref<1x1x1xf32, #tpu.memory_space<vmem>>, vector<1x1x1xf32>,
    %30 = math.absf %13 : vector<8x256xf32>
    %cst_15 = arith.constant dense<0.000000e+00> : vector<8xf32>
    %31 = vector.multi_reduction <add>, %30, %cst_15 [1] : vector<8x256xf32> to vector<8xf32>
    %32 = vector.shape_cast %31 : vector<8xf32> to vector<8x1xf32>
    %cst_16 = arith.constant dense<0.000000e+00> : vector<1xf32>
    %33 = vector.multi_reduction <add>, %32, %cst_16 [0] : vector<8x1xf32> to vector<1xf32>
    %34 = vector.shape_cast %33 : vector<1xf32> to vector<1x1xf32>
    %c0_17 = arith.constant 0 : index
    %c0_18 = arith.constant 0 : index
    %c0_19 = arith.constant 0 : index
    %35 = vector.load %arg6[%c0_17, %c0_18, %c0_19] : memref<1x1x1xf32, #tpu.memory_space<vmem>>, vector<1x1x1xf32>
    %36 = vector.shape_cast %35 : vector<1x1x1xf32> to vector<1x1xf32>
    %37 = vector.shape_cast %34 : vector<1x1xf32> to vector<1x1x1xf32>
    tpu.vector_store %arg6[%c0_17, %c0_18, %c0_19], %37 {strides = array<i32>} : memref<1x1x1xf32, #tpu.memory_space<vmem>>, vector<1x1x1xf32>,
    return
  }
  func.func @transform_0(%arg0: i32) -> (i32, i32) {
    %c0_i32 = arith.constant 0 : i32
    %c0_i32_0 = arith.constant 0 : i32
    return %arg0, %c0_i32 : i32, i32
  }
  func.func @transform_1(%arg0: i32) -> (i32, i32) {
    %c0_i32 = arith.constant 0 : i32
    %c0_i32_0 = arith.constant 0 : i32
    return %arg0, %c0_i32 : i32, i32
  }
  func.func @transform_2(%arg0: i32) -> (i32, i32) {
    %c0_i32 = arith.constant 0 : i32
    %c0_i32_0 = arith.constant 0 : i32
    %c0_i32_1 = arith.constant 0 : i32
    return %c0_i32, %c0_i32_0 : i32, i32
  }
  func.func @transform_3(%arg0: i32) -> (i32, i32, i32) {
    %c0_i32 = arith.constant 0 : i32
    %c0_i32_0 = arith.constant 0 : i32
    %c0_i32_1 = arith.constant 0 : i32
    return %arg0, %c0_i32, %c0_i32_0 : i32, i32, i32
  }
  func.func @transform_4(%arg0: i32) -> (i32, i32, i32) {
    %c0_i32 = arith.constant 0 : i32
    %c0_i32_0 = arith.constant 0 : i32
    %c0_i32_1 = arith.constant 0 : i32
    return %arg0, %c0_i32, %c0_i32_0 : i32, i32, i32
  }
  func.func @transform_5(%arg0: i32) -> (i32, i32, i32) {
    %c0_i32 = arith.constant 0 : i32
    %c0_i32_0 = arith.constant 0 : i32
    %c0_i32_1 = arith.constant 0 : i32
    return %arg0, %c0_i32, %c0_i32_0 : i32, i32, i32
  }
}

</mosaic_0001>

<bundles_post_ra>
// kernel: tpu_custom_call.1
= control target key start
LH: loop header
LB: loop body
LE: loop exit
PB: predicated region body
PF: predicated region fallthrough
CT: control target
= control target key end

     0   :  { %11 = vsyncpa [#allocation3], 0  ;;  %s403_s0 = inlined_call_operand.hbm [shape: f32[8,256], index: 0, kind: input, shape index: {}]   ;;  %s404_s1 = inlined_call_operand.hbm [shape: f32[8,256], index: 1, kind: input, shape index: {}]   ;;  %s405_s2 = inlined_call_operand.vmem [shape: f32[1,256], index: 2, kind: input, shape index: {}]   ;;  %s406_s3 = inlined_call_operand.hbm [shape: f32[1,1,1], index: 3, kind: output, shape index: {0}]   ;;  %s407_s4 = inlined_call_operand.hbm [shape: f32[1,1,1], index: 4, kind: output, shape index: {1}]   ;;  %s408_s5 = inlined_call_operand.hbm [shape: f32[1,1,1], index: 5, kind: output, shape index: {2}]  }
   0x1   :  { %12 = vsyncpa [#allocation6], 0 }
   0x2   :  { %13 = vsyncpa [#allocation4], 0 }
   0x3   :  { %14 = vsyncpa [#allocation9], 0  ;;  %s298_s18 = smov [#allocation2]   ;;  %s299_s20 = smov [#allocation5]  }
   0x4   :  { %s21_s19 = sshll.u32 %s298_s18, 4  ;;  %s31_s21 = sshll.u32 %s299_s20, 4  ;;  %s22_s19 = int_to_ptr.vmem [resolvable:$true] %s21_s19  ;;  %s32_s21 = int_to_ptr.vmem [resolvable:$true] %s31_s21 }
   0x5   :  { %s180_s24 = scalar_lea.hbm %s403_s0, 256 }
   0x6   :  { %p181_p0 = scmp.ne.s32.totalorder %s403_s0, %s180_s24  ;;  %p184_p1 = scmp.lt.u32.totalorder %s180_s24, %s403_s0 }
   0x8   :  { %p186_p2 = pnand %p184_p1, %p181_p0 }
   0xa   :  { %189 = shalt.err (!%p186_p2)
}
   0xb   :  { %s190_s29 = scalar_lea.vmem %s22_s19, 256  ;;  %p195_p4 = scmp.lt.s32.totalorder %s22_s19, %s22_s19 }
   0xc   :  { %p191_p3 = scmp.ne.s32.totalorder %s22_s19, %s190_s29  ;;  %p196_p5 = scmp.lt.s32.totalorder %s190_s29, %s190_s29 }
   0xe   :  { %p197_p6 = por %p196_p5, %p195_p4 }
  0x10   :  { %p198_p7 = pnand %p197_p6, %p191_p3 }
  0x12   :  { %201 = shalt.err (!%p198_p7)
}
  0x13   :  { %24 = dma.hbm_to_vmem [thread:$0]  %s403_s0, 256, %s22_s19, [#allocation3]  }
  0x14   :  { %s202_s9 = scalar_lea.hbm %s404_s1, 256 }
  0x15   :  { %p203_p8 = scmp.ne.s32.totalorder %s404_s1, %s202_s9  ;;  %p206_p9 = scmp.lt.u32.totalorder %s202_s9, %s404_s1 }
  0x17   :  { %p208_p10 = pnand %p206_p9, %p203_p8 }
  0x19   :  { %211 = shalt.err (!%p208_p10)
}
  0x1a   :  { %s212_s14 = scalar_lea.vmem %s32_s21, 256  ;;  %p217_p12 = scmp.lt.s32.totalorder %s32_s21, %s32_s21 }
  0x1b   :  { %p213_p11 = scmp.ne.s32.totalorder %s32_s21, %s212_s14  ;;  %p218_p13 = scmp.lt.s32.totalorder %s212_s14, %s212_s14 }
  0x1d   :  { %p219_p0 = por %p218_p13, %p217_p12 }
  0x1f   :  { %p220_p1 = pnand %p219_p0, %p213_p11 }
  0x21   :  { %223 = shalt.err (!%p220_p1)
}
  0x22   :  { %34 = dma.hbm_to_vmem [thread:$0]  %s404_s1, 256, %s32_s21, [#allocation6]  }
  0x23   :  { %290 = dma.done.wait [#allocation3], 256  }
  0x24   :  { %291 = vsyncadd [#allocation3], 4294967040 }
  0x25   :  { %292 = dma.done.wait [#allocation6], 256  }
  0x26   :  { %293 = vsyncadd [#allocation6], 4294967040  ;;  %v43_v0 = vld [vmem:[#allocation2] sm:$0xff]  ;;  %v45_v1 = vld [vmem:[#allocation5] sm:$0xff]  ;;  %s300_s16 = smov 1   ;;  %s301_s17 = smov 16   ;;  %v53_v9 = vlaneseq }
  0x27   :  { %v44_v2 = vld [vmem:[#allocation2 + $0x8] sm:$0xff]  ;;  %v47_v3 = vsub.f32 %v43_v0, %v45_v1  ;;  %v46_v4 = vld [vmem:[#allocation5 + $0x8] sm:$0xff]  ;;  %s302_s18 = smov 113   ;;  %v74_v10 = vld [vmem:[%s405_s2] sm:$0x3]  ;;  %v303_v17 = vmov 0  }
  0x28   :  { %v48_v5 = vsub.f32 %v44_v2, %v46_v4  ;;  %v78_v11 = vshrl.u32 %v53_v9, 7  ;;  %vm75_vm0 = vcmp.gt.f32.partialorder %v74_v10, 0.5  ;;  %v54_v12 = vand.u32 127, %v53_v9  ;;  %s304_s2 = smov [#allocation7]  }
  0x29   :  { %60 = vrot.lane.b32.xlu1 %v47_v3, %s300_s16  ;;  %49 = vrot.lane.b32.xlu0 %v47_v3, %s301_s17  ;;  %v91_v6 = vmul.f32 %v47_v3, %v47_v3  ;;  %v76_v18 = vsel %vm75_vm0, 1, %v303_v17  ;;  %s134_s20 = sshll.u32 %s304_s2, 4  ;;  %vm102_vm6 = vcmask 0   ;;  %s135_s20 = int_to_ptr.vmem [resolvable:$true] %s134_s20 }
  0x2a   :  { %v92_v7 = vmul.f32 %v48_v5, %v48_v5  ;;  %v79_v13 = vsub.s32 0, %v78_v11  ;;  %v83_v14 = vsub.s32 1, %v78_v11  ;;  %vm55_vm1 = vcmp.lt.s32.totalorder %v54_v12, 16  ;;  %s224_s21 = scalar_lea.vmem %s135_s20, 16  ;;  %s228_s22 = scalar_lea.vmem %s135_s20, 32 }
  0x2b   :  { %vm64_vm2 = vcmp.lt.s32.totalorder %v54_v12, 1  ;;  %vm71_vm3 = vcmp.lt.s32.totalorder %v54_v12, 113  ;;  %p225_p2 = scmp.ne.s32.totalorder %s135_s20, %s224_s21  ;;  %p229_p3 = scmp.lt.s32.totalorder %s135_s20, %s135_s20 }
  0x2c   :  { %v93_v8 = vadd.f32 %v92_v7, %v91_v6  ;;  %v80_v19 = vrot.slane %v76_v18, %v79_v13  ;;  %v84_v20 = vrot.slane %v76_v18, %v83_v14  ;;  %p230_p4 = scmp.lt.s32.totalorder %s228_s22, %s224_s21 }
  0x2d   :  { %62 = vrot.lane.b32.xlu1 %v48_v5, %s300_s16  ;;  %51 = vrot.lane.b32.xlu0 %v48_v5, %s301_s17 }
  0x2e   :  { %vm85_vm4 = vcmp.eq.s32.totalorder %v80_v19, 1  ;;  %vm86_vm5 = vcmp.eq.s32.totalorder %v84_v20, 1  ;;  %p231_p5 = por %p230_p4, %p229_p3 }
  0x30   :  { %p232_p6 = pnand %p231_p5, %p225_p2 }
  0x31   :  { %69 = vrot.lane.b32.xlu1 %v48_v5, %s302_s18  ;;  %67 = vrot.lane.b32.xlu0 %v47_v3, %s302_s18 }
  0x55   :  { %94 = vadd.xlane.f32.xlu1 %v93_v8 }
  0x9b   :  { %v61_v15 = vpop.permute.xlu1 %60  ;;  %v50_v16 = vpop.permute.xlu0 %49 }
  0x9f   :  { %v63_v21 = vpop.permute.xlu1 %62  ;;  %v52_v22 = vpop.permute.xlu0 %51 }
  0xa0   :  { %v56_v23 = vsel %vm55_vm1, %v50_v16, %v52_v22  ;;  %v57_v24 = vsel %vm55_vm1, %v52_v22, %v50_v16  ;;  %v65_v31 = vsel %vm64_vm2, %v61_v15, %v63_v21  ;;  %v66_v32 = vsel %vm64_vm2, %v63_v21, %v61_v15 }
  0xa1   :  { %v58_v25 = vsub.f32 %v57_v24, %v47_v3  ;;  %v59_v26 = vsub.f32 %v56_v23, %v48_v5 }
  0xa3   :  { %v104_v27 = vand.u32 2147483647, %v58_v25  ;;  %v105_v28 = vand.u32 2147483647, %v59_v26  ;;  %v70_v29 = vpop.permute.xlu1 %69  ;;  %v68_v30 = vpop.permute.xlu0 %67 }
  0xa4   :  { %v72_v33 = vsel %vm71_vm3, %v68_v30, %v70_v29  ;;  %v73_v34 = vsel %vm71_vm3, %v70_v29, %v68_v30 }
  0xa5   :  { %v87_v35 = vsel %vm85_vm4, %v72_v33, %v66_v32  ;;  %v88_v36 = vsel %vm86_vm5, %v73_v34, %v65_v31  ;;  %v106_v37 = vadd.f32 %v105_v28, %v104_v27 }
  0xa6   :  { %v89_v38 = vsub.f32 %v87_v35, %v47_v3  ;;  %v90_v39 = vsub.f32 %v88_v36, %v48_v5 }
  0xa7   :  { %107 = vadd.xlane.f32.xlu0 %v106_v37 }
  0xa8   :  { %v116_v40 = vand.u32 2147483647, %v89_v38  ;;  %v117_v41 = vand.u32 2147483647, %v90_v39 }
  0xaa   :  { %v118_v42 = vadd.f32 %v117_v41, %v116_v40 }
  0xac   :  { %119 = vadd.xlane.f32.xlu0 %v118_v42 }
  0xe2   :  { %v95_v43 = vpop.xlane.xlu1 %94 }
  0xe3   :  { %v96_v44 = vrot.slane %v95_v43, 4 }
  0xe5   :  { %v97_v45 = vadd.f32 %v96_v44, %v95_v43 }
  0xe7   :  { %v98_v46 = vrot.slane %v97_v45, 2 }
  0xe9   :  { %v99_v47 = vadd.f32 %v98_v46, %v97_v45 }
  0xeb   :  { %v100_v48 = vrot.slane %v99_v47, 1 }
  0xed   :  { %v101_v49 = vadd.f32 %v100_v48, %v99_v47 }
  0xef   :  { %103 = vst.msk [vmem:[#allocation7] sm:$0x1] %vm102_vm6, %v101_v49 }
  0xf0   :  { %235 = shalt.err (!%p232_p6)
}
  0xf1   :  { %s236_s25 = scalar_lea.hbm %s406_s3, 16 }
  0xf2   :  { %p237_p7 = scmp.ne.s32.totalorder %s406_s3, %s236_s25  ;;  %p240_p8 = scmp.lt.u32.totalorder %s236_s25, %s406_s3 }
  0xf4   :  { %p242_p9 = pnand %p240_p8, %p237_p7 }
  0xf6   :  { %245 = shalt.err (!%p242_p9)
}
  0xf7   :  { %137 = dma.vmem_to_hbm [thread:$0]  %s135_s20, 16, %s406_s3, [#allocation4]  }
  0xf8   :  { %s305_s7 = smov [#allocation8]   ;;  %s306_s9 = smov [#allocation10]  }
  0xf9   :  { %s144_s8 = sshll.u32 %s305_s7, 4  ;;  %s154_s10 = sshll.u32 %s306_s9, 4  ;;  %s145_s8 = int_to_ptr.vmem [resolvable:$true] %s144_s8  ;;  %s155_s10 = int_to_ptr.vmem [resolvable:$true] %s154_s10 }
  0xfa   :  { %s246_s3 = scalar_lea.vmem %s145_s8, 16  ;;  %s250_s11 = scalar_lea.vmem %s145_s8, 32 }
  0xfb   :  { %p247_p10 = scmp.ne.s32.totalorder %s145_s8, %s246_s3  ;;  %p251_p11 = scmp.lt.s32.totalorder %s145_s8, %s145_s8 }
  0xfc   :  { %p252_p12 = scmp.lt.s32.totalorder %s250_s11, %s246_s3 }
  0xfe   :  { %p253_p13 = por %p252_p12, %p251_p11 }
 0x100   :  { %p254_p0 = pnand %p253_p13, %p247_p10 }
 0x134   :  { %v108_v50 = vpop.xlane.xlu0 %107 }
 0x135   :  { %v109_v51 = vrot.slane %v108_v50, 4 }
 0x137   :  { %v110_v52 = vadd.f32 %v109_v51, %v108_v50 }
 0x139   :  { %v111_v53 = vrot.slane %v110_v52, 2  ;;  %v120_v54 = vpop.xlane.xlu0 %119 }
 0x13a   :  { %v121_v55 = vrot.slane %v120_v54, 4 }
 0x13b   :  { %v112_v56 = vadd.f32 %v111_v53, %v110_v52 }
 0x13c   :  { %v122_v57 = vadd.f32 %v121_v55, %v120_v54 }
 0x13d   :  { %v113_v58 = vrot.slane %v112_v56, 1 }
 0x13e   :  { %v123_v59 = vrot.slane %v122_v57, 2 }
 0x13f   :  { %v114_v60 = vadd.f32 %v113_v58, %v112_v56 }
 0x140   :  { %v124_v61 = vadd.f32 %v123_v59, %v122_v57 }
 0x141   :  { %115 = vst.msk [vmem:[#allocation8] sm:$0x1] %vm102_vm6, %v114_v60 }
 0x142   :  { %v125_v62 = vrot.slane %v124_v61, 1 }
 0x143   :  { %257 = shalt.err (!%p254_p0)
}
 0x144   :  { %s258_s14 = scalar_lea.hbm %s407_s4, 16 }
 0x145   :  { %p259_p1 = scmp.ne.s32.totalorder %s407_s4, %s258_s14  ;;  %p262_p2 = scmp.lt.u32.totalorder %s258_s14, %s407_s4 }
 0x147   :  { %p264_p3 = pnand %p262_p2, %p259_p1 }
 0x149   :  { %267 = shalt.err (!%p264_p3)
}
 0x14a   :  { %147 = dma.vmem_to_hbm [thread:$0]  %s145_s8, 16, %s407_s4, [#allocation9]   ;;  %v126_v63 = vadd.f32 %v125_v62, %v124_v61 }
 0x14b   :  { %s268_s19 = scalar_lea.vmem %s155_s10, 16  ;;  %s272_s2 = scalar_lea.vmem %s155_s10, 32 }
 0x14c   :  { %127 = vst.msk [vmem:[#allocation10] sm:$0x1] %vm102_vm6, %v126_v63  ;;  %p269_p4 = scmp.ne.s32.totalorder %s155_s10, %s268_s19  ;;  %p273_p5 = scmp.lt.s32.totalorder %s155_s10, %s155_s10 }
 0x14d   :  { %p274_p6 = scmp.lt.s32.totalorder %s272_s2, %s268_s19 }
 0x14f   :  { %p275_p7 = por %p274_p6, %p273_p5 }
 0x151   :  { %p276_p8 = pnand %p275_p7, %p269_p4 }
 0x153   :  { %279 = shalt.err (!%p276_p8)
}
 0x154   :  { %s280_s22 = scalar_lea.hbm %s408_s5, 16 }
 0x155   :  { %p281_p9 = scmp.ne.s32.totalorder %s408_s5, %s280_s22  ;;  %p284_p10 = scmp.lt.u32.totalorder %s280_s22, %s408_s5 }
 0x157   :  { %p286_p11 = pnand %p284_p10, %p281_p9 }
 0x159   :  { %289 = shalt.err (!%p286_p11)
}
 0x15a   :  { %157 = dma.vmem_to_hbm [thread:$0]  %s155_s10, 16, %s408_s5, [#allocation9]  }
 0x15b   :  { %294 = dma.done.wait [#allocation4], 16  }
 0x15c   :  { %295 = vsyncadd [#allocation4], 4294967280 }
 0x15d   :  { %296 = dma.done.wait [#allocation9], 32  }
 0x15e   :  { %297 = vsyncadd [#allocation9], 4294967264 }
 0x15f   :  { %167 = vsyncpa [#allocation3], 1 }
 0x160   :  { %168 = vsyncpa [#allocation6], 1 }
 0x161   :  { %169 = vsyncpa [#allocation4], 1 }
 0x162   :  { %170 = vsyncpa [#allocation9], 1 }

</bundles_post_ra>
